<compile_context>
chip_gen: v7x
topology: tpu7x:2x2x1
jax: 0.10.0
libtpu: 0.0.40
codegen_flags: <defaults>
</compile_context>

<pallas_src>
import numpy as np
import jax
import jax.numpy as jnp
from jax.experimental import pallas as pl
from jax.experimental.pallas import tpu as pltpu


# ----------------------------------------------------------------------------
# Pallas kernel: full reverse-diffusion sweep (eps-model + posterior update),
# one grid step per (pixel-tile, reverse-time-step).
# ----------------------------------------------------------------------------
def _sampler_kernel(sched_ref,                                          # scalar prefetch (SMEM), (3, T)
                    x_ref, noise_ref, w1c_ref, bte_ref, w2t_ref, b2_ref,  # inputs (VMEM)
                    o_ref):                                              # output block carries x_t
    t = pl.program_id(1)            # reverse step index ("arbitrary"); time = T-1-t
    n_t = pl.num_programs(1)

    # Initialise the resident state from x_T at the first reverse step.
    @pl.when(t == 0)
    def _():
        o_ref[...] = x_ref[...]

    x = o_ref[...]                                   # (C, tile_N) f32 state
    C = x.shape[0]

    # ---- eps = model(x_t, t): pointwise MLP, feature-major -------------------
    # Layer 1: W1^T @ x  as C unrolled VPU broadcast-FMAs (contraction depth C=4),
    # with b1 + temb[time] pre-folded into bte.
    h = bte_ref[0]                                   # (Hid, 1)
    for c in range(C):                               # static unroll, C is tiny
        h = h + w1c_ref[c] * x[c:c + 1, :]           # (Hid,1)*(1,tile_N) -> (Hid,tile_N)
    h = jnp.maximum(h, 0.0)
    # Layer 2: (C, Hid) @ (Hid, tile_N) on the MXU, lane-dense result.
    eps = jnp.dot(w2t_ref[...], h, preferred_element_type=jnp.float32)
    eps = eps + b2_ref[...]                          # (C, tile_N)

    # ---- x_{t-1} = coeff1[t]*x_t - coeff2[t]*eps + sqrt(var[t])*noise --------
    c1 = sched_ref[0, t]
    c2 = sched_ref[1, t]
    ns = sched_ref[2, t]                             # 0.0 at the final step (noise off)

    o_ref[...] = c1 * x - c2 * eps + ns * noise_ref[0]

    # Final clip(x_0, -1, 1) fused into the last reverse step.
    @pl.when(t == n_t - 1)
    def _():
        o_ref[...] = jnp.clip(o_ref[...], -1.0, 1.0)


def _pick_tile_n(n):
    for cand in (2048, 1024, 512, 256, 128):
        if n % cand == 0:
            return cand
    return n   # ragged / tiny N: one full-width block (block == full dim is legal)


def _build_sampler_call(C, N, Hid, T, tile_n):
    n_tiles = N // tile_n
    return pl.pallas_call(
        _sampler_kernel,
        out_shape=jax.ShapeDtypeStruct((C, N), jnp.float32),
        grid_spec=pltpu.PrefetchScalarGridSpec(
            num_scalar_prefetch=1,                   # sched (3, T) f32
            grid=(n_tiles, T),
            in_specs=[
                pl.BlockSpec((C, tile_n),    lambda i, t, *_: (0, i)),      # x_T tile
                pl.BlockSpec((1, C, tile_n), lambda i, t, *_: (t, 0, i)),   # noise[t] tile
                pl.BlockSpec((C, Hid, 1),    lambda i, t, *_: (0, 0, 0)),   # W1^T columns
                pl.BlockSpec((1, Hid, 1),    lambda i, t, *_: (t, 0, 0)),   # b1 + temb[time]
                pl.BlockSpec((C, Hid),       lambda i, t, *_: (0, 0)),      # W2^T
                pl.BlockSpec((C, 1),         lambda i, t, *_: (0, 0)),      # b2
            ],
            out_specs=pl.BlockSpec((C, tile_n), lambda i, t, *_: (0, i)),
        ),
        compiler_params=pltpu.CompilerParams(
            dimension_semantics=("parallel", "arbitrary"),
        ),
    )


# ----------------------------------------------------------------------------
# Sampler wrapper (glue in plain JAX / numpy)
# ----------------------------------------------------------------------------
class GaussianDiffusionSamplerPallas:
    def __init__(self, beta_1, beta_T, T, C, hidden, key):
        self.T, self.C, self.hidden = T, C, hidden

        # Diffusion schedule in float64 (matches torch .double()).
        betas = np.linspace(beta_1, beta_T, T, dtype=np.float64)
        alphas = 1.0 - betas
        alphas_bar = np.cumprod(alphas)
        alphas_bar_prev = np.concatenate([[1.0], alphas_bar])[:T]
        coeff1 = np.sqrt(1.0 / alphas)
        coeff2 = coeff1 * (1.0 - alphas) / np.sqrt(1.0 - alphas_bar)
        posterior_var = betas * (1.0 - alphas_bar_prev) / (1.0 - alphas_bar)
        var = np.concatenate([posterior_var[1:2], betas[1:]])   # p_mean_variance's var
        sqrt_var = np.sqrt(var)

        # Per-reverse-step scalars, time-reversed so kernel step s <-> time T-1-s.
        # Stored (3, T) so the long axis is last (minimal SMEM padding):
        #   row 0: coeff1, row 1: coeff2, row 2: noise_scale (=0 at time_step 0).
        sched = np.zeros((3, T), dtype=np.float32)
        for s, time_step in enumerate(reversed(range(T))):
            sched[0, s] = coeff1[time_step]
            sched[1, s] = coeff2[time_step]
            sched[2, s] = sqrt_var[time_step] if time_step > 0 else 0.0
        self.sched = jnp.asarray(sched)

        # Deterministic synthetic eps-model parameters (stored feature-major).
        k1, k2, k3 = jax.random.split(key, 3)
        w1 = jax.random.normal(k1, (C, hidden), jnp.float32) * 0.2
        b1 = jnp.zeros((hidden,), jnp.float32)
        w2 = jax.random.normal(k2, (hidden, C), jnp.float32) * 0.2
        b2 = jnp.zeros((C,), jnp.float32)
        temb = jax.random.normal(k3, (T, hidden), jnp.float32) * 0.2

        self.w1_cols = w1[:, :, None]                 # (C, Hid, 1): W1^T column per channel
        self.w2_t = jnp.transpose(w2)                 # (C, Hid)
        self.b2_col = b2[:, None]                     # (C, 1)
        bte = (temb + b1[None, :])[::-1]              # fold b1 into temb, time-reversed
        self.bte = bte[:, :, None]                    # (T, Hid, 1)

        self._fns = {}

    def _get_fn(self, B, C, H, W):
        shape_key = (B, C, H, W)
        if shape_key in self._fns:
            return self._fns[shape_key]
        N = B * H * W
        T = self.T
        tile_n = _pick_tile_n(N)
        call = _build_sampler_call(C, N, self.hidden, T, tile_n)

        def fn(x_T, key, sched, w1_cols, bte, w2_t, b2_col):
            # NCHW -> lane-dense feature-major (C, B*H*W)
            x = jnp.transpose(x_T, (1, 0, 2, 3)).reshape(C, N).astype(jnp.float32)
            # Per-step i.i.d. standard-normal noise (step 0 of reverse time uses 0 scale).
            noise = jax.random.normal(key, (T, C, N), jnp.float32)
            x0 = call(sched, x, noise, w1_cols, bte, w2_t, b2_col)
            return jnp.transpose(x0.reshape(C, B, H, W), (1, 0, 2, 3))

        jfn = jax.jit(fn)
        self._fns[shape_key] = jfn
        return jfn

    def __call__(self, x_T, key):
        B, C, H, W = x_T.shape
        assert C == self.C
        fn = self._get_fn(B, C, H, W)
        return fn(x_T, key, self.sched, self.w1_cols, self.bte,
                  self.w2_t, self.b2_col)


# ----------------------------------------------------------------------------
if __name__ == "__main__":
    B, C, H, W = 2, 4, 16, 16
    T = 8
    hidden = 32

    key = jax.random.PRNGKey(0)
    k_param, k_x, k_noise = jax.random.split(key, 3)

    sampler = GaussianDiffusionSamplerPallas(
        beta_1=1e-4, beta_T=0.02, T=T, C=C, hidden=hidden, key=k_param)

    x_T = jax.random.normal(k_x, (B, C, H, W), jnp.float32)
    x_0 = sampler(x_T, k_noise)
    x_0 = jax.block_until_ready(x_0)

    assert x_0.shape == (B, C, H, W)
    assert bool(jnp.all(jnp.isfinite(x_0)))
    assert bool(jnp.all((x_0 >= -1.0) & (x_0 <= 1.0)))
    print("KERNEL_OK")
</pallas_src>

<mosaic_0001>
module attributes {stable_mosaic.version = 11 : i64} {
  func.func @_sampler_kernel(%arg0: i32, %arg1: i32, %arg2: memref<3x8xf32, #tpu.memory_space<smem>>, %arg3: memref<4x512xf32, #tpu.memory_space<vmem>>, %arg4: memref<1x4x512xf32, #tpu.memory_space<vmem>>, %arg5: memref<4x32x1xf32, #tpu.memory_space<vmem>>, %arg6: memref<1x32x1xf32, #tpu.memory_space<vmem>>, %arg7: memref<4x32xf32, #tpu.memory_space<vmem>>, %arg8: memref<4x1xf32, #tpu.memory_space<vmem>>, %arg9: memref<4x512xf32, #tpu.memory_space<vmem>>) attributes {dimension_semantics = [#tpu.dimension_semantics<parallel>, #tpu.dimension_semantics<arbitrary>], iteration_bounds = array<i64: 1, 8>, scalar_prefetch = 1 : i64, scratch_operands = 0 : i64, tpu.core_type = #tpu.core_type<tc>, window_params = [{transform_indices = @transform_0, window_bounds = array<i64: 4, 512>}, {transform_indices = @transform_1, window_bounds = array<i64: 1, 4, 512>}, {pipeline_mode = #tpu.pipeline_mode<synchronous>, transform_indices = @transform_2, window_bounds = array<i64: 4, 32, 1>}, {transform_indices = @transform_3, window_bounds = array<i64: 1, 32, 1>}, {pipeline_mode = #tpu.pipeline_mode<synchronous>, transform_indices = @transform_4, window_bounds = array<i64: 4, 32>}, {pipeline_mode = #tpu.pipeline_mode<synchronous>, transform_indices = @transform_5, window_bounds = array<i64: 4, 1>}, {transform_indices = @transform_6, window_bounds = array<i64: 4, 512>}]} {
    %c0_i32 = arith.constant 0 : i32
    %0 = arith.cmpi eq, %arg1, %c0_i32 : i32
    %1 = arith.extui %0 : i1 to i32
    %c0_i32_0 = arith.constant 0 : i32
    %2 = arith.cmpi ne, %1, %c0_i32_0 : i32
    scf.if %2 {
      %c0_28 = arith.constant 0 : index
      %c0_29 = arith.constant 0 : index
      %62 = vector.load %arg3[%c0_28, %c0_29] : memref<4x512xf32, #tpu.memory_space<vmem>>, vector<4x512xf32>
      %c0_30 = arith.constant 0 : index
      %c0_31 = arith.constant 0 : index
      %63 = vector.load %arg9[%c0_30, %c0_31] : memref<4x512xf32, #tpu.memory_space<vmem>>, vector<4x512xf32>
      tpu.vector_store %arg9[%c0_30, %c0_31], %62 {strides = array<i32>} : memref<4x512xf32, #tpu.memory_space<vmem>>, vector<4x512xf32>,
    } else {
    }
    %c0 = arith.constant 0 : index
    %c0_1 = arith.constant 0 : index
    %3 = vector.load %arg9[%c0, %c0_1] : memref<4x512xf32, #tpu.memory_space<vmem>>, vector<4x512xf32>
    %c0_2 = arith.constant 0 : index
    %c0_3 = arith.constant 0 : index
    %c0_4 = arith.constant 0 : index
    %4 = vector.load %arg6[%c0_2, %c0_3, %c0_4] : memref<1x32x1xf32, #tpu.memory_space<vmem>>, vector<1x32x1xf32>
    %5 = vector.shape_cast %4 : vector<1x32x1xf32> to vector<32x1xf32>
    %c0_5 = arith.constant 0 : index
    %c0_6 = arith.constant 0 : index
    %c0_7 = arith.constant 0 : index
    %6 = vector.load %arg5[%c0_5, %c0_6, %c0_7] : memref<4x32x1xf32, #tpu.memory_space<vmem>>, vector<1x32x1xf32>
    %7 = vector.shape_cast %6 : vector<1x32x1xf32> to vector<32x1xf32>
    %8 = vector.extract_strided_slice %3 {offsets = [0, 0], sizes = [1, 512], strides = [1, 1]} : vector<4x512xf32> to vector<1x512xf32>
    %9 = vector.broadcast %7 : vector<32x1xf32> to vector<32x512xf32>
    %10 = vector.broadcast %8 : vector<1x512xf32> to vector<32x512xf32>
    %11 = arith.mulf %9, %10 : vector<32x512xf32>
    %12 = vector.broadcast %5 : vector<32x1xf32> to vector<32x512xf32>
    %13 = arith.addf %12, %11 : vector<32x512xf32>
    %c1 = arith.constant 1 : index
    %c0_8 = arith.constant 0 : index
    %c0_9 = arith.constant 0 : index
    %14 = vector.load %arg5[%c1, %c0_8, %c0_9] : memref<4x32x1xf32, #tpu.memory_space<vmem>>, vector<1x32x1xf32>
    %15 = vector.shape_cast %14 : vector<1x32x1xf32> to vector<32x1xf32>
    %16 = vector.extract_strided_slice %3 {offsets = [1, 0], sizes = [1, 512], strides = [1, 1]} : vector<4x512xf32> to vector<1x512xf32>
    %17 = vector.broadcast %15 : vector<32x1xf32> to vector<32x512xf32>
    %18 = vector.broadcast %16 : vector<1x512xf32> to vector<32x512xf32>
    %19 = arith.mulf %17, %18 : vector<32x512xf32>
    %20 = arith.addf %13, %19 : vector<32x512xf32>
    %c2 = arith.constant 2 : index
    %c0_10 = arith.constant 0 : index
    %c0_11 = arith.constant 0 : index
    %21 = vector.load %arg5[%c2, %c0_10, %c0_11] : memref<4x32x1xf32, #tpu.memory_space<vmem>>, vector<1x32x1xf32>
    %22 = vector.shape_cast %21 : vector<1x32x1xf32> to vector<32x1xf32>
    %23 = vector.extract_strided_slice %3 {offsets = [2, 0], sizes = [1, 512], strides = [1, 1]} : vector<4x512xf32> to vector<1x512xf32>
    %24 = vector.broadcast %22 : vector<32x1xf32> to vector<32x512xf32>
    %25 = vector.broadcast %23 : vector<1x512xf32> to vector<32x512xf32>
    %26 = arith.mulf %24, %25 : vector<32x512xf32>
    %27 = arith.addf %20, %26 : vector<32x512xf32>
    %c3 = arith.constant 3 : index
    %c0_12 = arith.constant 0 : index
    %c0_13 = arith.constant 0 : index
    %28 = vector.load %arg5[%c3, %c0_12, %c0_13] : memref<4x32x1xf32, #tpu.memory_space<vmem>>, vector<1x32x1xf32>
    %29 = vector.shape_cast %28 : vector<1x32x1xf32> to vector<32x1xf32>
    %30 = vector.extract_strided_slice %3 {offsets = [3, 0], sizes = [1, 512], strides = [1, 1]} : vector<4x512xf32> to vector<1x512xf32>
    %31 = vector.broadcast %29 : vector<32x1xf32> to vector<32x512xf32>
    %32 = vector.broadcast %30 : vector<1x512xf32> to vector<32x512xf32>
    %33 = arith.mulf %31, %32 : vector<32x512xf32>
    %34 = arith.addf %27, %33 : vector<32x512xf32>
    %cst = arith.constant 0.000000e+00 : f32
    %35 = vector.broadcast %cst : f32 to vector<32x512xf32>
    %36 = arith.maximumf %34, %35 : vector<32x512xf32>
    %c0_14 = arith.constant 0 : index
    %c0_15 = arith.constant 0 : index
    %37 = vector.load %arg7[%c0_14, %c0_15] : memref<4x32xf32, #tpu.memory_space<vmem>>, vector<4x32xf32>
    %cst_16 = arith.constant dense<0.000000e+00> : vector<4x512xf32>
    %38 = tpu.matmul %37, %36, %cst_16 {dimension_numbers = #tpu.dot_dimension_numbers<[1], [0], [0], [1], [0, 0, 1, 1], [], []>} : vector<4x32xf32>, vector<32x512xf32>, vector<4x512xf32> -> vector<4x512xf32>
    %c0_17 = arith.constant 0 : index
    %c0_18 = arith.constant 0 : index
    %39 = vector.load %arg8[%c0_17, %c0_18] : memref<4x1xf32, #tpu.memory_space<vmem>>, vector<4x1xf32>
    %40 = vector.broadcast %39 : vector<4x1xf32> to vector<4x512xf32>
    %41 = arith.addf %38, %40 : vector<4x512xf32>
    %c0_19 = arith.constant 0 : index
    %42 = arith.index_cast %arg1 : i32 to index
    %43 = memref.load %arg2[%c0_19, %42] : memref<3x8xf32, #tpu.memory_space<smem>>
    %c1_20 = arith.constant 1 : index
    %44 = arith.index_cast %arg1 : i32 to index
    %45 = memref.load %arg2[%c1_20, %44] : memref<3x8xf32, #tpu.memory_space<smem>>
    %c2_21 = arith.constant 2 : index
    %46 = arith.index_cast %arg1 : i32 to index
    %47 = memref.load %arg2[%c2_21, %46] : memref<3x8xf32, #tpu.memory_space<smem>>
    %48 = vector.broadcast %43 : f32 to vector<4x512xf32>
    %49 = arith.mulf %48, %3 : vector<4x512xf32>
    %50 = vector.broadcast %45 : f32 to vector<4x512xf32>
    %51 = arith.mulf %50, %41 : vector<4x512xf32>
    %52 = arith.subf %49, %51 : vector<4x512xf32>
    %c0_22 = arith.constant 0 : index
    %c0_23 = arith.constant 0 : index
    %c0_24 = arith.constant 0 : index
    %53 = vector.load %arg4[%c0_22, %c0_23, %c0_24] : memref<1x4x512xf32, #tpu.memory_space<vmem>>, vector<1x4x512xf32>
    %54 = vector.shape_cast %53 : vector<1x4x512xf32> to vector<4x512xf32>
    %55 = vector.broadcast %47 : f32 to vector<4x512xf32>
    %56 = arith.mulf %55, %54 : vector<4x512xf32>
    %57 = arith.addf %52, %56 : vector<4x512xf32>
    %c0_25 = arith.constant 0 : index
    %c0_26 = arith.constant 0 : index
    %58 = vector.load %arg9[%c0_25, %c0_26] : memref<4x512xf32, #tpu.memory_space<vmem>>, vector<4x512xf32>
    tpu.vector_store %arg9[%c0_25, %c0_26], %57 {strides = array<i32>} : memref<4x512xf32, #tpu.memory_space<vmem>>, vector<4x512xf32>,
    %c7_i32 = arith.constant 7 : i32
    %59 = arith.cmpi eq, %arg1, %c7_i32 : i32
    %60 = arith.extui %59 : i1 to i32
    %c0_i32_27 = arith.constant 0 : i32
    %61 = arith.cmpi ne, %60, %c0_i32_27 : i32
    scf.if %61 {
      %c0_28 = arith.constant 0 : index
      %c0_29 = arith.constant 0 : index
      %62 = vector.load %arg9[%c0_28, %c0_29] : memref<4x512xf32, #tpu.memory_space<vmem>>, vector<4x512xf32>
      %cst_30 = arith.constant -1.000000e+00 : f32
      %cst_31 = arith.constant 1.000000e+00 : f32
      %63 = vector.broadcast %cst_30 : f32 to vector<4x512xf32>
      %64 = arith.maximumf %63, %62 : vector<4x512xf32>
      %65 = vector.broadcast %cst_31 : f32 to vector<4x512xf32>
      %66 = arith.minimumf %65, %64 : vector<4x512xf32>
      %c0_32 = arith.constant 0 : index
      %c0_33 = arith.constant 0 : index
      %67 = vector.load %arg9[%c0_32, %c0_33] : memref<4x512xf32, #tpu.memory_space<vmem>>, vector<4x512xf32>
      tpu.vector_store %arg9[%c0_32, %c0_33], %66 {strides = array<i32>} : memref<4x512xf32, #tpu.memory_space<vmem>>, vector<4x512xf32>,
    } else {
    }
    return
  }
  func.func @transform_0(%arg0: i32, %arg1: i32, %arg2: memref<3x8xf32, #tpu.memory_space<smem>>) -> (i32, i32) {
    %c0_i32 = arith.constant 0 : i32
    %c0_i32_0 = arith.constant 0 : i32
    return %c0_i32, %arg0 : i32, i32
  }
  func.func @transform_1(%arg0: i32, %arg1: i32, %arg2: memref<3x8xf32, #tpu.memory_space<smem>>) -> (i32, i32, i32) {
    %c0_i32 = arith.constant 0 : i32
    %c0_i32_0 = arith.constant 0 : i32
    return %arg1, %c0_i32, %arg0 : i32, i32, i32
  }
  func.func @transform_2(%arg0: i32, %arg1: i32, %arg2: memref<3x8xf32, #tpu.memory_space<smem>>) -> (i32, i32, i32) {
    %c0_i32 = arith.constant 0 : i32
    %c0_i32_0 = arith.constant 0 : i32
    %c0_i32_1 = arith.constant 0 : i32
    %c0_i32_2 = arith.constant 0 : i32
    return %c0_i32, %c0_i32_0, %c0_i32_1 : i32, i32, i32
  }
  func.func @transform_3(%arg0: i32, %arg1: i32, %arg2: memref<3x8xf32, #tpu.memory_space<smem>>) -> (i32, i32, i32) {
    %c0_i32 = arith.constant 0 : i32
    %c0_i32_0 = arith.constant 0 : i32
    %c0_i32_1 = arith.constant 0 : i32
    return %arg1, %c0_i32, %c0_i32_0 : i32, i32, i32
  }
  func.func @transform_4(%arg0: i32, %arg1: i32, %arg2: memref<3x8xf32, #tpu.memory_space<smem>>) -> (i32, i32) {
    %c0_i32 = arith.constant 0 : i32
    %c0_i32_0 = arith.constant 0 : i32
    %c0_i32_1 = arith.constant 0 : i32
    return %c0_i32, %c0_i32_0 : i32, i32
  }
  func.func @transform_5(%arg0: i32, %arg1: i32, %arg2: memref<3x8xf32, #tpu.memory_space<smem>>) -> (i32, i32) {
    %c0_i32 = arith.constant 0 : i32
    %c0_i32_0 = arith.constant 0 : i32
    %c0_i32_1 = arith.constant 0 : i32
    return %c0_i32, %c0_i32_0 : i32, i32
  }
  func.func @transform_6(%arg0: i32, %arg1: i32, %arg2: memref<3x8xf32, #tpu.memory_space<smem>>) -> (i32, i32) {
    %c0_i32 = arith.constant 0 : i32
    %c0_i32_0 = arith.constant 0 : i32
    return %c0_i32, %arg0 : i32, i32
  }
}

</mosaic_0001>

<bundles_post_ra>
// kernel: fn.1
= control target key start
LH: loop header
LB: loop body
LE: loop exit
PB: predicated region body
PF: predicated region fallthrough
CT: control target
= control target key end

     0   :  { %s1481_s0 = inlined_call_operand.vmem [shape: f32[3,8], index: 0, kind: input, shape index: {}]   ;;  %s1482_s1 = inlined_call_operand.vmem [shape: f32[4,512], index: 1, kind: input, shape index: {}]   ;;  %s1483_s2 = inlined_call_operand.vmem [shape: f32[8,4,512], index: 2, kind: input, shape index: {}]   ;;  %s1484_s3 = inlined_call_operand.vmem [shape: f32[4,32,1], index: 3, kind: input, shape index: {}]   ;;  %s1485_s4 = inlined_call_operand.vmem [shape: f32[8,32,1], index: 4, kind: input, shape index: {}]   ;;  %s1486_s5 = inlined_call_operand.vmem [shape: f32[4,32], index: 5, kind: input, shape index: {}]   ;;  %s1487_s6 = inlined_call_operand.vmem [shape: f32[4,1], index: 6, kind: input, shape index: {}]   ;;  %s1488_s7 = inlined_call_operand.vmem [shape: f32[4,512], index: 7, kind: output, shape index: {}]  }
   0x1   :  { %s12_s26 = sshll.u32 %s1481_s0, 4  ;;  %s13_s26 = int_to_ptr.vmem [resolvable:$true] %s12_s26 }
   0x2   :  { %s1137_s27 = scalar_lea.vmem %s13_s26, 64  ;;  %p1142_p1 = scmp.lt.s32.totalorder %s13_s26, %s13_s26 }
   0x3   :  { %p1138_p0 = scmp.ne.s32.totalorder %s13_s26, %s1137_s27  ;;  %p1143_p2 = scmp.lt.s32.totalorder %s1137_s27, %s1137_s27 }
   0x5   :  { %p1144_p3 = por %p1143_p2, %p1142_p1 }
   0x7   :  { %p1145_p4 = pnand %p1144_p3, %p1138_p0 }
   0x9   :  { %1148 = shalt.err (!%p1145_p4)  }
   0xa   :  { %s1175_s28 = smov [#allocation3]  }
   0xb   :  { %15 = dma.vmem_to_smem %s13_s26, 64, %s1175_s28, [#allocation2] }
   0xc   :  { %1161 = dma.done.wait [#allocation2], 64 }
   0xd   :  { %1162 = vsyncadd [#allocation2], 4294967232 }
   0xe   :  { %17 = sfence }
   0xf   :  { %s1221_s29 = smov 0   ;;  %s1223_s30 = smov 0  }
  0x10   :  { %s1225_s8 = smov 0  }
  0x11 LB: > { %s32_s0 = sadd.s32 1, %s1169_s30  ;;  %p1057_p5 = scmp.ge.s32.totalorder %s1173_s8, 1  ;;  %s1173_s8 = sphi %s1225_s8, %s23_s8   ;;  %s1169_s30 = sphi %s1223_s30, %s1490_s30   ;;  %s1165_s29 = sphi %s1221_s29, %s1489_s29  }
  0x12   : > { %p33_p6 = scmp.ge.s32.totalorder %s32_s0, 8  ;;  %p259_p7 = scmp.lt.s32.totalorder %s1173_s8, 9 }
  0x14   : > { %s1492_s0 = smov (%p33_p6, %s32_s0), 0  ;;  %p260_p8 = pnand %p1057_p5, %p259_p7 }
  0x15   : > { %p310_p9 = scmp.lt.s32.totalorder (!%p260_p8), %s1165_s29, 7  ;;  %p1062_p10 = scmp.ne.s32.totalorder (!%p260_p8), %s1165_s29, 0 }
  0x16   : > { %263 = sbr.rel (%p260_p8) target bundleno = 453 (0x1c5), region = 44 }
  0x1d   : > { %s311_s9 = scalar_select %p310_p9, %s1165_s29, 7 }
  0x1e   : > { %333 = sbr.rel (%p1062_p10) target bundleno = 37 (0x25), region = 48  ;;  %v334_v0 = vld [vmem:[%s1482_s1] sm:$0xff] (!%p1062_p10)  ;;  %v335_v1 = vld [vmem:[%s1482_s1 + $0x8] sm:$0xff] (!%p1062_p10) }
  0x1f   : > { %s1086_s10 = sshll.u32 %s311_s9, 4  ;;  %s1087_s11 = sshll.u32 %s311_s9, 5  ;;  %336 = vst [vmem:[%s1488_s7] sm:$0xff] (!%p1062_p10), %v334_v0  ;;  %337 = vst [vmem:[%s1488_s7 + $0x8] sm:$0xff] (!%p1062_p10), %v335_v1 }
  0x20   : > { %s1246_s14 = scalar_lea.vmem %s1483_s2, %s1086_s10  ;;  %s1251_s17 = scalar_lea.vmem %s1485_s4, %s1087_s11 }
  0x25 PF: > { %v344_v2 = vld [vmem:[%s1484_s3] sm:$0xff]  ;;  %v1176_v4 = vmov 0   ;;  %v345_v5 = vld [vmem:[%s1484_s3 + $0x8] sm:$0xff]  ;;  %v346_v9 = vld [vmem:[%s1484_s3 + $0x10] sm:$0xff]  ;;  %v1177_v24 = vmov 0.0   ;;  %v370_v25 = vlaneseq  ;;  %vm760_vm0 = vcmask 261120  }
  0x26   : > { %v340_v3 = vld [vmem:[%s1251_s17] sm:$0xff]  ;;  %1136 = vset.pattern.permute.xlu1 %v1176_v4  ;;  %1135 = vset.pattern.permute.xlu0 %v1176_v4  ;;  %v341_v6 = vld [vmem:[%s1251_s17 + $0x8] sm:$0xff]  ;;  %v347_v10 = vld [vmem:[%s1484_s3 + $0x18] sm:$0xff]  ;;  %s907_s9 = sshra.s32 %s1165_s29, 7  ;;  %s906_s18 = sld [smem:[#allocation3 + %s1165_s29]] }
  0x27   : > { %350 = vperm.xlu0 %1135, %v344_v2   ;;  %424 = vperm.xlu1 %1136, %v340_v3   ;;  %v1063_v7 = vld [vmem:[%s1484_s3 + $0x20] sm:$0xff]  ;;  %v1064_v8 = vld [vmem:[%s1484_s3 + $0x28] sm:$0xff]  ;;  %v342_v13 = vld [vmem:[%s1251_s17 + $0x10] sm:$0xff]  ;;  %v371_v26 = vshrl.u32 %v370_v25, 7  ;;  %s1088_s10 = sshll.u32 %s907_s9, 7  ;;  %p1079_p11 = scmp.ne.s32.totalorder %s1165_s29, 7 }
  0x28   : > { %v1067_v11 = vld [vmem:[%s1484_s3 + $0x40] sm:$0xff]  ;;  %v1068_v12 = vld [vmem:[%s1484_s3 + $0x48] sm:$0xff]  ;;  %v343_v14 = vld [vmem:[%s1251_s17 + $0x18] sm:$0xff]  ;;  %828 = vmatprep.mubr.f32.mxu0 %v1177_v24  ;;  %899 = vmatprep.mubr.f32.mxu1 %v1177_v24  ;;  %s1089_s11 = sadd.s32 128, %s1088_s10  ;;  %s912_s17 = sand.u32 127, %s1165_s29 }
  0x29   : > { %v1065_v15 = vld [vmem:[%s1484_s3 + $0x30] sm:$0xff]  ;;  %v1066_v16 = vld [vmem:[%s1484_s3 + $0x38] sm:$0xff]  ;;  %v1071_v17 = vld [vmem:[%s1484_s3 + $0x60] sm:$0xff]  ;;  %v372_v27 = vsub.s32 0, %v371_v26  ;;  %v376_v28 = vsub.s32 4, %v371_v26  ;;  %v485_v31 = vsub.s32 1, %v371_v26  ;;  %s913_s12 = sadd.s32 %s1089_s11, %s912_s17 }
  0x2a   : > { %v1072_v18 = vld [vmem:[%s1484_s3 + $0x68] sm:$0xff]  ;;  %v1069_v19 = vld [vmem:[%s1484_s3 + $0x50] sm:$0xff]  ;;  %v1070_v20 = vld [vmem:[%s1484_s3 + $0x58] sm:$0xff]  ;;  %v489_v32 = vsub.s32 5, %v371_v26  ;;  %v578_v33 = vsub.s32 2, %v371_v26  ;;  %v582_v34 = vsub.s32 6, %v371_v26 }
  0x2b   : > { %355 = vperm.xlu0 %1135, %v345_v5   ;;  %429 = vperm.xlu1 %1136, %v341_v6   ;;  %v1073_v21 = vld [vmem:[%s1484_s3 + $0x70] sm:$0xff]  ;;  %v1074_v22 = vld [vmem:[%s1484_s3 + $0x78] sm:$0xff]  ;;  %v754_v23 = vld [vmem:[%s1487_s6] sm:$0xf]  ;;  %v671_v37 = vsub.s32 3, %v371_v26  ;;  %v675_v38 = vsub.s32 7, %v371_v26 }
  0x2c   : > { %v1324_v29 = vld [vmem:[%s1488_s7] sm:$0xff]  ;;  %v1329_v30 = vld [vmem:[%s1488_s7 + $0x8] sm:$0xff]  ;;  %s1091_s13 = sadd.s32 256, %s1088_s10  ;;  %s914_s15 = sld [smem:[#allocation3 + %s913_s12]] }
  0x2d   : > { %v373_v39 = vrot.slane %v1324_v29, %v372_v27  ;;  %v377_v40 = vrot.slane %v1324_v29, %v376_v28  ;;  %v381_v41 = vrot.slane %v1329_v30, %v372_v27  ;;  %v385_v42 = vrot.slane %v1329_v30, %v376_v28  ;;  %s917_s16 = sadd.s32 %s1091_s13, %s912_s17 }
  0x2e   : > { %v486_v43 = vrot.slane %v1324_v29, %v485_v31  ;;  %v490_v44 = vrot.slane %v1324_v29, %v489_v32  ;;  %v494_v45 = vrot.slane %v1329_v30, %v485_v31  ;;  %v498_v46 = vrot.slane %v1329_v30, %v489_v32  ;;  %s918_s19 = sld [smem:[#allocation3 + %s917_s16]] }
  0x2f   : > { %465 = vperm.xlu0 %1135, %v1063_v7   ;;  %470 = vperm.xlu1 %1136, %v1064_v8   ;;  %v579_v47 = vrot.slane %v1324_v29, %v578_v33  ;;  %v583_v48 = vrot.slane %v1324_v29, %v582_v34  ;;  %v587_v49 = vrot.slane %v1329_v30, %v578_v33 }
  0x30   : > { %v591_v50 = vrot.slane %v1329_v30, %v582_v34  ;;  %v672_v53 = vrot.slane %v1324_v29, %v671_v37  ;;  %v680_v54 = vrot.slane %v1329_v30, %v671_v37  ;;  %v676_v55 = vrot.slane %v1324_v29, %v675_v38 }
  0x31   : > { %v684_v56 = vrot.slane %v1329_v30, %v675_v38  ;;  %v1347_v57 = vrot.slane %v373_v39, %v372_v27  ;;  %v1349_v58 = vrot.slane %v377_v40, %v372_v27  ;;  %v1351_v59 = vrot.slane %v381_v41, %v372_v27 }
  0x32   : > { %v1353_v60 = vrot.slane %v385_v42, %v372_v27  ;;  %v1355_v61 = vrot.slane %v486_v43, %v485_v31  ;;  %v1357_v62 = vrot.slane %v490_v44, %v485_v31  ;;  %v1359_v63 = vrot.slane %v494_v45, %v485_v31 }
  0x33   : > { %360 = vperm.xlu0 %1135, %v346_v9   ;;  %365 = vperm.xlu1 %1136, %v347_v10   ;;  %v1361_v0 = vrot.slane %v498_v46, %v485_v31  ;;  %v1363_v1 = vrot.slane %v579_v47, %v578_v33  ;;  %v1365_v2 = vrot.slane %v583_v48, %v578_v33 }
  0x34   : > { %v1367_v3 = vrot.slane %v587_v49, %v578_v33  ;;  %v1369_v4 = vrot.slane %v591_v50, %v578_v33  ;;  %v1371_v7 = vrot.slane %v672_v53, %v671_v37  ;;  %v1373_v8 = vrot.slane %v680_v54, %v671_v37 }
  0x35   : > { %v1375_v9 = vrot.slane %v676_v55, %v671_v37  ;;  %v1377_v10 = vrot.slane %v684_v56, %v671_v37 }
  0x37   : > { %558 = vperm.xlu0 %1135, %v1067_v11   ;;  %563 = vperm.xlu1 %1136, %v1068_v12  }
  0x3b   : > { %434 = vperm.xlu0 %1135, %v342_v13   ;;  %439 = vperm.xlu1 %1136, %v343_v14  }
  0x3f   : > { %475 = vperm.xlu0 %1135, %v1065_v15   ;;  %480 = vperm.xlu1 %1136, %v1066_v16  }
  0x43   : > { %651 = vperm.xlu0 %1135, %v1071_v17   ;;  %656 = vperm.xlu1 %1136, %v1072_v18  }
  0x47   : > { %568 = vperm.xlu0 %1135, %v1069_v19   ;;  %573 = vperm.xlu1 %1136, %v1070_v20  }
  0x4b   : > { %661 = vperm.xlu0 %1135, %v1073_v21   ;;  %666 = vperm.xlu1 %1136, %v1074_v22  }
  0x4f   : > { %757 = vperm.xlu0 %1135, %v754_v23  }
  0xa6   : > { %v351_v35 = vpop.permute.xlu0 %350  ;;  %v425_v36 = vpop.permute.xlu1 %424 }
  0xa7   : > { %v406_v11 = vmul.f32 %v1347_v57, %v351_v35  ;;  %v407_v12 = vmul.f32 %v1349_v58, %v351_v35  ;;  %v408_v13 = vmul.f32 %v1351_v59, %v351_v35  ;;  %v409_v14 = vmul.f32 %v1353_v60, %v351_v35 }
  0xa9   : > { %v442_v31 = vadd.f32 %v425_v36, %v406_v11  ;;  %v443_v32 = vadd.f32 %v425_v36, %v407_v12  ;;  %v444_v33 = vadd.f32 %v425_v36, %v408_v13  ;;  %v445_v34 = vadd.f32 %v425_v36, %v409_v14 }
  0xaa   : > { %v356_v51 = vpop.permute.xlu0 %355  ;;  %v430_v52 = vpop.permute.xlu1 %429 }
  0xab   : > { %v410_v15 = vmul.f32 %v1347_v57, %v356_v51  ;;  %v411_v16 = vmul.f32 %v1349_v58, %v356_v51  ;;  %v412_v17 = vmul.f32 %v1351_v59, %v356_v51  ;;  %v413_v18 = vmul.f32 %v1353_v60, %v356_v51 }
  0xad   : > { %v446_v35 = vadd.f32 %v430_v52, %v410_v15  ;;  %v447_v37 = vadd.f32 %v430_v52, %v411_v16  ;;  %v448_v38 = vadd.f32 %v430_v52, %v412_v17  ;;  %v449_v39 = vadd.f32 %v430_v52, %v413_v18 }
  0xae   : > { %v466_v5 = vpop.permute.xlu0 %465  ;;  %v471_v6 = vpop.permute.xlu1 %470 }
  0xaf   : > { %v519_v19 = vmul.f32 %v1355_v61, %v466_v5  ;;  %v520_v20 = vmul.f32 %v1357_v62, %v466_v5  ;;  %v521_v21 = vmul.f32 %v1359_v63, %v466_v5  ;;  %v522_v22 = vmul.f32 %v1361_v0, %v466_v5 }
  0xb0   : > { %v523_v23 = vmul.f32 %v1355_v61, %v471_v6  ;;  %v524_v24 = vmul.f32 %v1357_v62, %v471_v6  ;;  %v525_v25 = vmul.f32 %v1359_v63, %v471_v6  ;;  %v526_v26 = vmul.f32 %v1361_v0, %v471_v6 }
  0xb1   : > { %v535_v40 = vadd.f32 %v519_v19, %v442_v31  ;;  %v537_v41 = vadd.f32 %v521_v21, %v444_v33  ;;  %v536_v42 = vadd.f32 %v520_v20, %v443_v32  ;;  %v538_v43 = vadd.f32 %v522_v22, %v445_v34 }
  0xb2   : > { %v361_v27 = vpop.permute.xlu0 %360  ;;  %v366_v28 = vpop.permute.xlu1 %365  ;;  %v539_v44 = vadd.f32 %v523_v23, %v446_v35  ;;  %v541_v45 = vadd.f32 %v525_v25, %v448_v38  ;;  %v540_v48 = vadd.f32 %v524_v24, %v447_v37  ;;  %v542_v49 = vadd.f32 %v526_v26, %v449_v39 }
  0xb3   : > { %v414_v5 = vmul.f32 %v1347_v57, %v361_v27  ;;  %v415_v6 = vmul.f32 %v1349_v58, %v361_v27  ;;  %v416_v11 = vmul.f32 %v1351_v59, %v361_v27  ;;  %v417_v12 = vmul.f32 %v1353_v60, %v361_v27 }
  0xb4   : > { %v418_v13 = vmul.f32 %v1347_v57, %v366_v28  ;;  %v419_v14 = vmul.f32 %v1349_v58, %v366_v28  ;;  %v420_v15 = vmul.f32 %v1351_v59, %v366_v28  ;;  %v421_v16 = vmul.f32 %v1353_v60, %v366_v28 }
  0xb6   : > { %v559_v46 = vpop.permute.xlu0 %558  ;;  %v564_v47 = vpop.permute.xlu1 %563 }
  0xb7   : > { %v612_v50 = vmul.f32 %v1363_v1, %v559_v46  ;;  %v613_v51 = vmul.f32 %v1365_v2, %v559_v46  ;;  %v614_v36 = vmul.f32 %v1367_v3, %v559_v46  ;;  %v615_v53 = vmul.f32 %v1369_v4, %v559_v46 }
  0xb8   : > { %v616_v52 = vmul.f32 %v1363_v1, %v564_v47  ;;  %v617_v54 = vmul.f32 %v1365_v2, %v564_v47  ;;  %v618_v55 = vmul.f32 %v1367_v3, %v564_v47  ;;  %v619_v56 = vmul.f32 %v1369_v4, %v564_v47 }
  0xb9   : > { %v629_v19 = vadd.f32 %v613_v51, %v536_v42  ;;  %v631_v20 = vadd.f32 %v615_v53, %v538_v43  ;;  %v628_v21 = vadd.f32 %v612_v50, %v535_v40  ;;  %v630_v22 = vadd.f32 %v614_v36, %v537_v41 }
  0xba   : > { %v435_v17 = vpop.permute.xlu0 %434  ;;  %v440_v18 = vpop.permute.xlu1 %439  ;;  %v633_v23 = vadd.f32 %v617_v54, %v540_v48  ;;  %v635_v24 = vadd.f32 %v619_v56, %v542_v49  ;;  %v632_v25 = vadd.f32 %v616_v52, %v539_v44  ;;  %v634_v26 = vadd.f32 %v618_v55, %v541_v45 }
  0xbb   : > { %v450_v31 = vadd.f32 %v435_v17, %v414_v5  ;;  %v451_v27 = vadd.f32 %v435_v17, %v415_v6  ;;  %v452_v32 = vadd.f32 %v435_v17, %v416_v11  ;;  %v453_v57 = vadd.f32 %v435_v17, %v417_v12 }
  0xbc   : > { %v454_v33 = vadd.f32 %v440_v18, %v418_v13  ;;  %v455_v58 = vadd.f32 %v440_v18, %v419_v14  ;;  %v456_v34 = vadd.f32 %v440_v18, %v420_v15  ;;  %v457_v59 = vadd.f32 %v440_v18, %v421_v16 }
  0xbe   : > { %v476_v35 = vpop.permute.xlu0 %475  ;;  %v481_v60 = vpop.permute.xlu1 %480 }
  0xbf   : > { %v527_v28 = vmul.f32 %v1355_v61, %v476_v35  ;;  %v528_v37 = vmul.f32 %v1357_v62, %v476_v35  ;;  %v529_v38 = vmul.f32 %v1359_v63, %v476_v35  ;;  %v530_v39 = vmul.f32 %v1361_v0, %v476_v35 }
  0xc0   : > { %v531_v40 = vmul.f32 %v1355_v61, %v481_v60  ;;  %v532_v41 = vmul.f32 %v1357_v62, %v481_v60  ;;  %v533_v42 = vmul.f32 %v1359_v63, %v481_v60  ;;  %v534_v43 = vmul.f32 %v1361_v0, %v481_v60 }
  0xc1   : > { %v543_v44 = vadd.f32 %v527_v28, %v450_v31  ;;  %v544_v45 = vadd.f32 %v528_v37, %v451_v27  ;;  %v545_v46 = vadd.f32 %v529_v38, %v452_v32  ;;  %v546_v47 = vadd.f32 %v530_v39, %v453_v57 }
  0xc2   : > { %v547_v48 = vadd.f32 %v531_v40, %v454_v33  ;;  %v548_v49 = vadd.f32 %v532_v41, %v455_v58  ;;  %v549_v50 = vadd.f32 %v533_v42, %v456_v34  ;;  %v550_v51 = vadd.f32 %v534_v43, %v457_v59  ;;  %v652_v36 = vpop.permute.xlu0 %651  ;;  %v657_v53 = vpop.permute.xlu1 %656 }
  0xc3   : > { %v705_v52 = vmul.f32 %v1371_v7, %v652_v36  ;;  %v707_v61 = vmul.f32 %v1373_v8, %v652_v36  ;;  %v709_v62 = vmul.f32 %v1371_v7, %v657_v53  ;;  %v711_v63 = vmul.f32 %v1373_v8, %v657_v53 }
  0xc4   : > { %v706_v0 = vmul.f32 %v1375_v9, %v652_v36  ;;  %v710_v54 = vmul.f32 %v1375_v9, %v657_v53  ;;  %v708_v55 = vmul.f32 %v1377_v10, %v652_v36  ;;  %v712_v56 = vmul.f32 %v1377_v10, %v657_v53 }
  0xc5   : > { %v721_v5 = vadd.f32 %v705_v52, %v628_v21  ;;  %v725_v6 = vadd.f32 %v709_v62, %v632_v25  ;;  %v723_v11 = vadd.f32 %v707_v61, %v630_v22  ;;  %v727_v12 = vadd.f32 %v711_v63, %v634_v26 }
  0xc6   : > { %v569_v13 = vpop.permute.xlu0 %568  ;;  %v574_v14 = vpop.permute.xlu1 %573  ;;  %v722_v15 = vadd.f32 %v706_v0, %v629_v19  ;;  %v726_v16 = vadd.f32 %v710_v54, %v633_v23  ;;  %v724_v17 = vadd.f32 %v708_v55, %v631_v20  ;;  %v728_v18 = vadd.f32 %v712_v56, %v635_v24 }
  0xc7   : > { %v620_v31 = vmul.f32 %v1363_v1, %v569_v13  ;;  %v621_v27 = vmul.f32 %v1365_v2, %v569_v13  ;;  %v622_v32 = vmul.f32 %v1367_v3, %v569_v13  ;;  %v623_v57 = vmul.f32 %v1369_v4, %v569_v13 }
  0xc8   : > { %v624_v33 = vmul.f32 %v1363_v1, %v574_v14  ;;  %v625_v21 = vmul.f32 %v1365_v2, %v574_v14  ;;  %v626_v22 = vmul.f32 %v1367_v3, %v574_v14  ;;  %v627_v25 = vmul.f32 %v1369_v4, %v574_v14 }
  0xc9   : > { %v636_v19 = vadd.f32 %v620_v31, %v543_v44  ;;  %v637_v23 = vadd.f32 %v621_v27, %v544_v45  ;;  %v638_v20 = vadd.f32 %v622_v32, %v545_v46  ;;  %v639_v24 = vadd.f32 %v623_v57, %v546_v47 }
  0xca   : > { %v662_v26 = vpop.permute.xlu0 %661  ;;  %v667_v58 = vpop.permute.xlu1 %666  ;;  %v640_v34 = vadd.f32 %v624_v33, %v547_v48  ;;  %v641_v59 = vadd.f32 %v625_v21, %v548_v49  ;;  %v642_v35 = vadd.f32 %v626_v22, %v549_v50  ;;  %v643_v60 = vadd.f32 %v627_v25, %v550_v51 }
  0xcb   : > { %v713_v28 = vmul.f32 %v1371_v7, %v662_v26  ;;  %v714_v1 = vmul.f32 %v1375_v9, %v662_v26  ;;  %v715_v2 = vmul.f32 %v1373_v8, %v662_v26  ;;  %v716_v3 = vmul.f32 %v1377_v10, %v662_v26 }
  0xcc   : > { %v717_v4 = vmul.f32 %v1371_v7, %v667_v58  ;;  %v718_v37 = vmul.f32 %v1375_v9, %v667_v58  ;;  %v719_v38 = vmul.f32 %v1373_v8, %v667_v58  ;;  %v720_v39 = vmul.f32 %v1377_v10, %v667_v58 }
  0xcd   : > { %v738_v40 = vmax.f32 %v722_v15, 0.0  ;;  %v742_v41 = vmax.f32 %v726_v16, 0.0  ;;  %v740_v42 = vmax.f32 %v724_v17, 0.0  ;;  %v744_v43 = vmax.f32 %v728_v18, 0.0  ;;  %v753_v15 = vld [vmem:[%s1486_s5] sm:$0xf] }
  0xce   : > { %v733_v44 = vadd.f32 %v717_v4, %v640_v34  ;;  %v734_v45 = vadd.f32 %v718_v37, %v641_v59  ;;  %v735_v46 = vadd.f32 %v719_v38, %v642_v35  ;;  %v736_v47 = vadd.f32 %v720_v39, %v643_v60  ;;  %v758_v16 = vpop.permute.xlu0 %757  ;;  %v938_v34 = vld [vmem:[%s1246_s14 + $0x8] sm:$0xff] }
  0xcf   : > { %v1092_v48 = vpack.c.bf16 %v742_v41, %v738_v40  ;;  %v1100_v49 = vpack.c.bf16 %v744_v43, %v740_v42  ;;  %v737_v50 = vmax.f32 %v721_v5, 0.0  ;;  %v741_v51 = vmax.f32 %v725_v6, 0.0 }
  0xd0   : > { %v739_v36 = vmax.f32 %v723_v11, 0.0  ;;  %v743_v7 = vmax.f32 %v727_v12, 0.0  ;;  %v730_v53 = vadd.f32 %v714_v1, %v637_v23  ;;  %v750_v9 = vmax.f32 %v734_v45, 0.0 }
  0xd1   : > { %1093 = vmatprep.subr.bf16.mxu0 %v1092_v48  ;;  %1101 = vmatprep.subr.bf16.mxu1 %v1100_v49  ;;  %v1094_v8 = vpack.c.bf16 %v741_v51, %v737_v50  ;;  %v732_v10 = vadd.f32 %v716_v3, %v639_v24  ;;  %v752_v52 = vmax.f32 %v736_v47, 0.0  ;;  %v729_v61 = vadd.f32 %v713_v28, %v636_v19  ;;  %v937_v19 = vld [vmem:[%s1246_s14] sm:$0xff] }
  0xd2   : > { %v1102_v62 = vpack.c.bf16 %v743_v7, %v739_v36  ;;  %v746_v63 = vmax.f32 %v730_v53, 0.0  ;;  %v749_v0 = vmax.f32 %v733_v44, 0.0  ;;  %v731_v54 = vadd.f32 %v715_v2, %v638_v20 }
  0xd3   : > { %1095 = vmatpush1.bf16.msra.mxu0 %v1094_v8  ;;  %v748_v55 = vmax.f32 %v732_v10, 0.0  ;;  %v745_v56 = vmax.f32 %v729_v61, 0.0  ;;  %v751_v5 = vmax.f32 %v735_v46, 0.0  ;;  %v922_v18 = vstv %s914_s15 }
  0xd4   : > { %1103 = vmatpush1.bf16.msra.mxu1 %v1102_v62  ;;  %v1096_v6 = vpack.c.bf16 %v750_v9, %v746_v63  ;;  %v747_v11 = vmax.f32 %v731_v54, 0.0  ;;  %v919_v57 = vstv %s906_s18  ;;  %v939_v23 = vstv %s918_s19 }
  0xd5   : > { %v1104_v12 = vpack.c.bf16 %v752_v52, %v748_v55  ;;  %v1098_v13 = vpack.c.bf16 %v749_v0, %v745_v56  ;;  %v920_v26 = vmul.f32 %v919_v57, %v1324_v29  ;;  %v921_v59 = vmul.f32 %v919_v57, %v1329_v30 }
  0xd6   : > { %1097 = vmatprep.subr.bf16.mxu0 %v1096_v6  ;;  %v1106_v14 = vpack.c.bf16 %v751_v5, %v747_v11  ;;  %v940_v28 = vmul.f32 %v939_v23, %v937_v19  ;;  %v941_v2 = vmul.f32 %v939_v23, %v938_v34 }
  0xd7   : > { %1105 = vmatprep.subr.bf16.mxu1 %v1104_v12  ;;  %1099 = vmatpush1.bf16.msra.mxu0 %v1098_v13 }
  0xd8   : > { %1107 = vmatpush1.bf16.msra.mxu1 %v1106_v14 }
  0xda   : > { %1075 = vmatmul.mubr.msk.f32.vlgmr.msra.gmra.mrb[0].mxu0 %vm760_vm0, %v753_v15 }
  0xdb   : > { %1076 = vmatmul.mubr.msk.f32.vlgmr.msra.gmra.mrb[0].mxu1 %vm760_vm0, %v753_v15 }
 0x1ad   : > { %v830_v17 = vpop.f32.mrb[0].mxu0 }
 0x1ae   : > { %v831_v31 = vadd.f32 %v830_v17, %v758_v16  ;;  %v901_v27 = vpop.f32.mrb[0].mxu1  ;;  %v832_v32 = vpop.f32.mrb[1].mxu0 }
 0x1af   : > { %v902_v33 = vadd.f32 %v901_v27, %v758_v16  ;;  %v833_v21 = vadd.f32 %v832_v32, %v758_v16  ;;  %v903_v22 = vpop.f32.mrb[1].mxu1 }
 0x1b0   : > { %v923_v25 = vmul.f32 %v922_v18, %v831_v31  ;;  %v904_v20 = vadd.f32 %v903_v22, %v758_v16 }
 0x1b1   : > { %v925_v24 = vmul.f32 %v922_v18, %v902_v33  ;;  %v924_v58 = vmul.f32 %v922_v18, %v833_v21 }
 0x1b2   : > { %v926_v35 = vmul.f32 %v922_v18, %v904_v20 }
 0x1b3   : > { %v931_v60 = vcombine.low %v923_v25, %v924_v58 }
 0x1b4   : > { %v932_v1 = vcombine.low %v925_v24, %v926_v35  ;;  %949 = sbr.rel (%p1079_p11) target bundleno = 453 (0x1c5), region = 52 }
 0x1b5   : > { %v935_v3 = vsub.f32 %v920_v26, %v931_v60 }
 0x1b6   : > { %v936_v4 = vsub.f32 %v921_v59, %v932_v1 }
 0x1b7   : > { %v942_v37 = vadd.f32 %v940_v28, %v935_v3 }
 0x1b8   : > { %v943_v38 = vadd.f32 %v941_v2, %v936_v4 }
 0x1b9   : > { %944 = vst [vmem:[%s1488_s7] sm:$0xff] %v942_v37 }
 0x1ba   : > { %945 = vst [vmem:[%s1488_s7 + $0x8] sm:$0xff] %v943_v38 }
 0x1c0   : > { %v950_v29 = vld [vmem:[%s1488_s7] sm:$0xff] }
 0x1c1   : > { %v951_v30 = vld [vmem:[%s1488_s7 + $0x8] sm:$0xff]  ;;  %v1080_v39 = vclamps-f32 %v950_v29, 1.0 }
 0x1c2   : > { %v1081_v40 = vclamps-f32 %v951_v30, 1.0 }
 0x1c3   : > { %956 = vst [vmem:[%s1488_s7] sm:$0xff] %v1080_v39 }
 0x1c4   : > { %957 = vst [vmem:[%s1488_s7 + $0x8] sm:$0xff] %v1081_v40 }
 0x1c5 PF: > { %s23_s8 = sadd.s32 1, %s1173_s8   ;;  %s1489_s29 = smov %s1169_s30 }
 0x1c6   : > { %p20_p12 = scmp.ge.s32.totalorder %s23_s8, 10   ;;  %s1490_s30 = smov %s1492_s0 }
 0x1c8   :  { %22 = sbr.rel (!%p20_p12) target bundleno = 17 (0x11), region = 91 }

</bundles_post_ra>
